<compile_context>
chip_gen: v6e
topology: v6e:2x2x1
jax: 0.10.0
libtpu: 0.0.40
codegen_flags: <defaults>
</compile_context>

<pallas_src>
import functools

import jax
import jax.numpy as jnp
from jax.experimental import pallas as pl
from jax.experimental.pallas import tpu as pltpu


def _round_up(x, m):
    return ((x + m - 1) // m) * m


# ------------------------- small / weight-resident path ----------------------

def _fc_small_bias_kernel(x_ref, w_ref, b_ref, o_ref):
    acc = jnp.dot(x_ref[...], w_ref[...], preferred_element_type=jnp.float32)
    o_ref[...] = (acc + b_ref[...].astype(jnp.float32)).astype(o_ref.dtype)


def _fc_small_kernel(x_ref, w_ref, o_ref):
    o_ref[...] = jnp.dot(
        x_ref[...], w_ref[...], preferred_element_type=jnp.float32
    ).astype(o_ref.dtype)


# ------------------------------ tiled (large) path ---------------------------

def _fc_tiled_bias_kernel(x_ref, w_ref, b_ref, o_ref, acc_ref):
    k = pl.program_id(2)

    @pl.when(k == 0)
    def _():
        # Fold the bias into the accumulator init (saves zeros pass + add).
        acc_ref[...] = jnp.broadcast_to(
            b_ref[...].astype(jnp.float32), acc_ref.shape
        )

    acc_ref[...] += jnp.dot(
        x_ref[...], w_ref[...], preferred_element_type=jnp.float32
    )

    @pl.when(k == pl.num_programs(2) - 1)
    def _():
        o_ref[...] = acc_ref[...].astype(o_ref.dtype)


def _fc_tiled_kernel(x_ref, w_ref, o_ref, acc_ref):
    k = pl.program_id(2)

    @pl.when(k == 0)
    def _():
        acc_ref[...] = jnp.zeros_like(acc_ref)

    acc_ref[...] += jnp.dot(
        x_ref[...], w_ref[...], preferred_element_type=jnp.float32
    )

    @pl.when(k == pl.num_programs(2) - 1)
    def _():
        o_ref[...] = acc_ref[...].astype(o_ref.dtype)


# ---------------------------------- wrapper ----------------------------------

_VMEM_LIMIT = 48 << 20          # safe on v5e/v6e (128 MiB) and v7x (64 MiB phys)
_SMALL_WEIGHT_BYTES = 4 << 20   # weight-resident fast-path threshold
_SMALL_VMEM_BYTES = 24 << 20    # total VMEM budget allowed for the fast path


@functools.partial(jax.jit, static_argnames=("tm", "tn", "tk", "mxu_dtype"))
def fully_connected(x, weight, bias=None, *, tm=None, tn=None, tk=None,
                    mxu_dtype=None):
    """Pallas implementation of FullyConnected.forward.

    x:      (..., in_features)
    weight: (in_features, out_features)
    bias:   (out_features,) or None
    mxu_dtype: optional dtype (e.g. jnp.bfloat16) for the MXU operands;
               accumulation is always f32, output keeps x.dtype.
    """
    in_features, out_features = weight.shape
    lead_shape = x.shape[:-1]
    M = 1
    for d in lead_shape:
        M *= d
    K, N = in_features, out_features
    out_dtype = x.dtype

    x2 = x.reshape(M, K)
    w = weight
    if mxu_dtype is not None:
        x2 = x2.astype(mxu_dtype)
        w = w.astype(mxu_dtype)
    itemsize = jnp.dtype(x2.dtype).itemsize

    cost = pl.CostEstimate(
        flops=2 * M * K * N,
        transcendentals=0,
        bytes_accessed=(M * K + K * N + M * N + N) * itemsize,
    )

    # ---------------- fast path: weight resident in VMEM, 1-D grid over M ----
    tm_fast = min(_round_up(max(M, 1), 8), 256)
    fast_vmem = itemsize * (2 * tm_fast * K + K * N + 2 * tm_fast * N) + 4 * N
    use_fast = (
        tm is None and tn is None and tk is None
        and K * N * itemsize <= _SMALL_WEIGHT_BYTES
        and fast_vmem <= _SMALL_VMEM_BYTES
    )

    if use_fast:
        Mp = _round_up(M, tm_fast)
        if Mp != M:
            x2 = jnp.pad(x2, ((0, Mp - M), (0, 0)))
        grid = (Mp // tm_fast,)

        in_specs = [
            pl.BlockSpec((tm_fast, K), lambda i: (i, 0)),
            pl.BlockSpec((K, N), lambda i: (0, 0)),   # constant index -> loaded once
        ]
        args = (x2, w)
        kernel = _fc_small_kernel
        if bias is not None:
            in_specs.append(pl.BlockSpec((1, N), lambda i: (0, 0)))
            args = (x2, w, bias.reshape(1, N))
            kernel = _fc_small_bias_kernel

        out = pl.pallas_call(
            kernel,
            out_shape=jax.ShapeDtypeStruct((Mp, N), out_dtype),
            grid_spec=pltpu.PrefetchScalarGridSpec(
                num_scalar_prefetch=0,
                grid=grid,
                in_specs=in_specs,
                out_specs=pl.BlockSpec((tm_fast, N), lambda i: (i, 0)),
            ),
            compiler_params=pltpu.CompilerParams(
                dimension_semantics=("parallel",),
                vmem_limit_bytes=_VMEM_LIMIT,
            ),
            cost_estimate=cost,
        )(*args)

        if Mp != M:
            out = out[:M]
        return out.reshape(*lead_shape, N)

    # ---------------- tiled path: 3-D grid, K innermost, f32 accumulator -----
    # Lane-dense >=256-wide output tiles when the problem is big enough;
    # a full-extent block otherwise (no padding in that dimension).
    tm = tm or (256 if M >= 256 else M)
    tn = tn or (256 if N >= 256 else N)
    tk = tk or (1024 if K >= 1024 else K)

    Mp, Np, Kp = _round_up(M, tm), _round_up(N, tn), _round_up(K, tk)
    if (Mp, Kp) != (M, K):
        x2 = jnp.pad(x2, ((0, Mp - M), (0, Kp - K)))
    if (Kp, Np) != (K, N):
        w = jnp.pad(w, ((0, Kp - K), (0, Np - N)))

    grid = (Mp // tm, Np // tn, Kp // tk)

    in_specs = [
        pl.BlockSpec((tm, tk), lambda i, j, k: (i, k)),
        pl.BlockSpec((tk, tn), lambda i, j, k: (k, j)),
    ]
    args = (x2, w)
    kernel = _fc_tiled_kernel
    if bias is not None:
        b2 = bias if Np == N else jnp.pad(bias, (0, Np - N))
        in_specs.append(pl.BlockSpec((1, tn), lambda i, j, k: (0, j)))
        args = (x2, w, b2.reshape(1, Np))
        kernel = _fc_tiled_bias_kernel

    out = pl.pallas_call(
        kernel,
        out_shape=jax.ShapeDtypeStruct((Mp, Np), out_dtype),
        grid_spec=pltpu.PrefetchScalarGridSpec(
            num_scalar_prefetch=0,
            grid=grid,
            in_specs=in_specs,
            out_specs=pl.BlockSpec((tm, tn), lambda i, j, k: (i, j)),
            scratch_shapes=[pltpu.VMEM((tm, tn), jnp.float32)],
        ),
        compiler_params=pltpu.CompilerParams(
            dimension_semantics=("parallel", "parallel", "arbitrary"),
            vmem_limit_bytes=_VMEM_LIMIT,
        ),
        cost_estimate=cost,
    )(*args)

    if (Mp, Np) != (M, N):
        out = out[:M, :N]
    return out.reshape(*lead_shape, N)


def init_fully_connected_params(key, in_features, out_features, bias=True):
    """Deterministic re-implementation of FullyConnected.reset_parameters."""
    stdv = 1.0 / (out_features ** 0.5)
    kw, kb = jax.random.split(key)
    weight = jax.random.uniform(
        kw, (in_features, out_features), jnp.float32, minval=-stdv, maxval=stdv
    )
    b = None
    if bias:
        b = jax.random.uniform(
            kb, (out_features,), jnp.float32, minval=-stdv, maxval=stdv
        )
    return weight, b


if __name__ == "__main__":
    key = jax.random.PRNGKey(0)
    k_x, k_p = jax.random.split(key)

    # Small GCN-style shapes: batch=2, nodes=8, in_features=32 -> out_features=64
    batch, nodes, in_features, out_features = 2, 8, 32, 64
    x = jax.random.normal(k_x, (batch, nodes, in_features), jnp.float32)
    weight, bias = init_fully_connected_params(k_p, in_features, out_features, bias=True)

    ref = jnp.matmul(x, weight) + bias

    # Fast (weight-resident) path.
    out = fully_connected(x, weight, bias)
    out = jax.block_until_ready(out)
    assert out.shape == (batch, nodes, out_features), out.shape
    assert jnp.allclose(out, ref, atol=1e-5, rtol=1e-5), "mismatch vs reference (fast path)"

    # No-bias path.
    out_nb = jax.block_until_ready(fully_connected(x, weight, None))
    assert jnp.allclose(out_nb, jnp.matmul(x, weight), atol=1e-5, rtol=1e-5), \
        "mismatch vs reference (no-bias)"

    # Force the tiled (3-D grid, accumulator) path with explicit tiles to
    # exercise it at small shapes as well.
    out_tiled = jax.block_until_ready(
        fully_connected(x, weight, bias, tm=8, tn=64, tk=32)
    )
    assert jnp.allclose(out_tiled, ref, atol=1e-5, rtol=1e-5), \
        "mismatch vs reference (tiled path)"

    print("KERNEL_OK")
</pallas_src>

<mosaic_0001>
module attributes {stable_mosaic.version = 11 : i64} {
  func.func @_fc_small_bias_kernel(%arg0: i32, %arg1: memref<16x32xf32, #tpu.memory_space<vmem>>, %arg2: memref<32x64xf32, #tpu.memory_space<vmem>>, %arg3: memref<1x64xf32, #tpu.memory_space<vmem>>, %arg4: memref<16x64xf32, #tpu.memory_space<vmem>>) attributes {dimension_semantics = [#tpu.dimension_semantics<parallel>], iteration_bounds = array<i64: 1>, scalar_prefetch = 0 : i64, scratch_operands = 0 : i64, tpu.core_type = #tpu.core_type<tc>, window_params = [{transform_indices = @transform_0, window_bounds = array<i64: 16, 32>}, {pipeline_mode = #tpu.pipeline_mode<synchronous>, transform_indices = @transform_1, window_bounds = array<i64: 32, 64>}, {pipeline_mode = #tpu.pipeline_mode<synchronous>, transform_indices = @transform_2, window_bounds = array<i64: 1, 64>}, {transform_indices = @transform_3, window_bounds = array<i64: 16, 64>}]} {
    %c0 = arith.constant 0 : index
    %c0_0 = arith.constant 0 : index
    %0 = vector.load %arg1[%c0, %c0_0] : memref<16x32xf32, #tpu.memory_space<vmem>>, vector<16x32xf32>
    %c0_1 = arith.constant 0 : index
    %c0_2 = arith.constant 0 : index
    %1 = vector.load %arg2[%c0_1, %c0_2] : memref<32x64xf32, #tpu.memory_space<vmem>>, vector<32x64xf32>
    %cst = arith.constant dense<0.000000e+00> : vector<16x64xf32>
    %2 = tpu.matmul %0, %1, %cst {dimension_numbers = #tpu.dot_dimension_numbers<[1], [0], [0], [1], [0, 0, 1, 1], [], []>} : vector<16x32xf32>, vector<32x64xf32>, vector<16x64xf32> -> vector<16x64xf32>
    %c0_3 = arith.constant 0 : index
    %c0_4 = arith.constant 0 : index
    %3 = vector.load %arg3[%c0_3, %c0_4] : memref<1x64xf32, #tpu.memory_space<vmem>>, vector<1x64xf32>
    %4 = vector.broadcast %3 : vector<1x64xf32> to vector<16x64xf32>
    %5 = arith.addf %2, %4 : vector<16x64xf32>
    %c0_5 = arith.constant 0 : index
    %c0_6 = arith.constant 0 : index
    %6 = vector.load %arg4[%c0_5, %c0_6] : memref<16x64xf32, #tpu.memory_space<vmem>>, vector<16x64xf32>
    tpu.vector_store %arg4[%c0_5, %c0_6], %5 {strides = array<i32>} : memref<16x64xf32, #tpu.memory_space<vmem>>, vector<16x64xf32>,
    return
  }
  func.func @transform_0(%arg0: i32) -> (i32, i32) {
    %c0_i32 = arith.constant 0 : i32
    %c0_i32_0 = arith.constant 0 : i32
    return %arg0, %c0_i32 : i32, i32
  }
  func.func @transform_1(%arg0: i32) -> (i32, i32) {
    %c0_i32 = arith.constant 0 : i32
    %c0_i32_0 = arith.constant 0 : i32
    %c0_i32_1 = arith.constant 0 : i32
    return %c0_i32, %c0_i32_0 : i32, i32
  }
  func.func @transform_2(%arg0: i32) -> (i32, i32) {
    %c0_i32 = arith.constant 0 : i32
    %c0_i32_0 = arith.constant 0 : i32
    %c0_i32_1 = arith.constant 0 : i32
    return %c0_i32, %c0_i32_0 : i32, i32
  }
  func.func @transform_3(%arg0: i32) -> (i32, i32) {
    %c0_i32 = arith.constant 0 : i32
    %c0_i32_0 = arith.constant 0 : i32
    return %arg0, %c0_i32 : i32, i32
  }
}

</mosaic_0001>

<bundles_post_ra>
// kernel: fully_connected.1
= control target key start
LH: loop header
LB: loop body
LE: loop exit
PB: predicated region body
PF: predicated region fallthrough
CT: control target
= control target key end

     0   :  { %8 = vsyncpa [#allocation3], 0  ;;  %s298_s0 = inlined_call_operand.hbm [shape: f32[16,32], index: 0, kind: input, shape index: {}]   ;;  %s299_s1 = inlined_call_operand.hbm [shape: f32[32,64], index: 1, kind: input, shape index: {}]   ;;  %s300_s2 = inlined_call_operand.vmem [shape: f32[1,64], index: 2, kind: input, shape index: {}]   ;;  %s301_s3 = inlined_call_operand.hbm [shape: f32[16,64], index: 3, kind: output, shape index: {}]  }
   0x1   :  { %9 = vsyncpa [#allocation6], 0 }
   0x2   :  { %10 = vsyncpa [#allocation4], 0  ;;  %s250_s12 = smov [#allocation2]  }
   0x3   :  { %s16_s13 = sshll.u32 %s250_s12, 4  ;;  %s17_s13 = int_to_ptr.vmem [resolvable:$true] %s16_s13 }
   0x4   :  { %s192_s14 = scalar_lea.vmem %s17_s13, 256  ;;  %p197_p1 = scmp.lt.s32.totalorder %s17_s13, %s17_s13 }
   0x5   :  { %p193_p0 = scmp.ne.s32.totalorder %s17_s13, %s192_s14  ;;  %p198_p2 = scmp.lt.s32.totalorder %s192_s14, %s192_s14 }
   0x7   :  { %p199_p3 = por %p198_p2, %p197_p1 }
   0x9   :  { %p200_p4 = pnand %p199_p3, %p193_p0 }
   0xb   :  { %203 = shalt.err (!%p200_p4)
}
   0xc   :  { %s251_s15 = smov 128   ;;  %s252_s16 = smov 8  }
   0xd   :  { %22 = dma.hbm_to_vmem [thread:$0]  %s298_s0, 256, %s17_s13, [#allocation3], %s251_s15, %s251_s15, %s252_s16  }
   0xe   :  { %s253_s19 = smov [#allocation5]  }
   0xf   :  { %s28_s20 = sshll.u32 %s253_s19, 4  ;;  %s29_s20 = int_to_ptr.vmem [resolvable:$true] %s28_s20 }
  0x10   :  { %s212_s21 = scalar_lea.vmem %s29_s20, 512  ;;  %p217_p6 = scmp.lt.s32.totalorder %s29_s20, %s29_s20 }
  0x11   :  { %p213_p5 = scmp.ne.s32.totalorder %s29_s20, %s212_s21  ;;  %p218_p7 = scmp.lt.s32.totalorder %s212_s21, %s212_s21 }
  0x13   :  { %p219_p8 = por %p218_p7, %p217_p6 }
  0x15   :  { %p220_p9 = pnand %p219_p8, %p213_p5 }
  0x17   :  { %223 = shalt.err (!%p220_p9)
}
  0x18   :  { %34 = dma.hbm_to_vmem [thread:$0]  %s299_s1, 512, %s29_s20, [#allocation6], %s251_s15, %s251_s15, %s252_s16  }
  0x19   :  { %244 = dma.done.wait [#allocation3], 256  }
  0x1a   :  { %245 = vsyncadd [#allocation3], 4294967040 }
  0x1b   :  { %246 = dma.done.wait [#allocation6], 512  }
  0x1c   :  { %247 = vsyncadd [#allocation6], 4294966784  ;;  %vm56_vm0 = vcmask 261120   ;;  %v48_v0 = vld [vmem:[#allocation5 + $0x18] sm:$0xff]  ;;  %v47_v1 = vld [vmem:[#allocation5 + $0x10] sm:$0xff]  ;;  %vm138_vm1 = vcmask 523264  }
  0x1d   :  { %168 = vmatprep.subr.mxu0 %v48_v0  ;;  %v43_v2 = vld [vmem:[#allocation2] sm:$0xff]  ;;  %v46_v3 = vld [vmem:[#allocation5 + $0x8] sm:$0xff]  ;;  %v45_v4 = vld [vmem:[#allocation5] sm:$0xff]  ;;  %s254_s24 = smov [#allocation7]  }
  0x1e   :  { %169 = vmatpush3.msra.mxu0 %v48_v0  ;;  %176 = vmatprep.mubr.msk.f32.mxu0 %vm56_vm0, %v43_v2  ;;  %v44_v5 = vld [vmem:[#allocation2 + $0x8] sm:$0xff]  ;;  %v159_v6 = vld [vmem:[%s300_s2] ss:$0 sm:$0xff]  ;;  %s146_s25 = sshll.u32 %s254_s24, 4  ;;  %s147_s25 = int_to_ptr.vmem [resolvable:$true] %s146_s25 }
  0x1f   :  { %170 = vmatprep.subr.mxu0 %v47_v1  ;;  %s224_s26 = scalar_lea.vmem %s147_s25, 256  ;;  %p229_p11 = scmp.lt.s32.totalorder %s147_s25, %s147_s25 }
  0x20   :  { %171 = vmatpush3.msra.mxu0 %v47_v1  ;;  %p225_p10 = scmp.ne.s32.totalorder %s147_s25, %s224_s26  ;;  %p230_p12 = scmp.lt.s32.totalorder %s224_s26, %s224_s26 }
  0x21   :  { %172 = vmatprep.subr.mxu0 %v46_v3 }
  0x22   :  { %173 = vmatpush3.msra.mxu0 %v46_v3  ;;  %p231_p13 = por %p230_p12, %p229_p11 }
  0x23   :  { %174 = vmatprep.subr.mxu0 %v45_v4 }
  0x24   :  { %175 = vmatpush3.msra.mxu0 %v45_v4  ;;  %p232_p0 = pnand %p231_p13, %p225_p10 }
  0x25   :  { %177 = vmatmul.mubr.msk.f32.vlgmr.msra.gmra.mxu0 %vm56_vm0, %v44_v5 }
  0xe5   :  { %v178_v7 = vpop.f32.mrf.mxu0 }
  0xe6   :  { %v135_v8 = vadd.f32 %v178_v7, %v159_v6 }
  0xe7   :  { %v129_v9 = vpop.f32.mrf.mxu0 }
  0xe8   :  { %v130_v10 = vadd.f32 %v159_v6, %v129_v9  ;;  %140 = vst.msk [vmem:[#allocation7 + $0x8] sm:$0xff] %vm138_vm1, %v135_v8 }
  0xea   :  { %139 = vst.msk [vmem:[#allocation7] sm:$0xff] %vm138_vm1, %v130_v10 }
  0xeb   :  { %235 = shalt.err (!%p232_p0)
}
  0xec   :  { %152 = dma.vmem_to_hbm [thread:$0]  %s147_s25, 256, %s301_s3, [#allocation4], %s251_s15, %s251_s15, %s252_s16  }
  0xed   :  { %248 = dma.done.wait [#allocation4], 256  }
  0xee   :  { %249 = vsyncadd [#allocation4], 4294967040 }
  0xef   :  { %156 = vsyncpa [#allocation3], 1 }
  0xf0   :  { %157 = vsyncpa [#allocation6], 1 }
  0xf1   :  { %158 = vsyncpa [#allocation4], 1 }

</bundles_post_ra>
